<compile_context>
chip_gen: v5e
topology: v5e:2x2
jax: 0.10.0
libtpu: 0.0.40
codegen_flags: <defaults>
</compile_context>

<pallas_src>
import jax
import jax.numpy as jnp
from jax.experimental import pallas as pl
from jax.experimental.pallas import tpu as pltpu

HID = 5      # hidden width of fc1
LANES = 512  # lane-axis width of each block (multiple of 128)


def mlp_kernel(params_ref, x_ref, o_ref):
    # params_ref: SMEM f32[16] = [w1(5), b1(5), w2(5), b2(1)]
    # x_ref / o_ref: (R, LANES) VMEM tiles; batch packed across sublanes+lanes.
    x = x_ref[...]                                       # (R, LANES)
    acc = jnp.full(x.shape, params_ref[3 * HID], x.dtype)   # splat b2
    # fc1 (K=1 outer product) + ReLU + fc2 (5-term FMA) — pure VPU arithmetic,
    # unrolled at trace time. No MXU pass for a 1->5->1 MLP.
    for j in range(HID):
        h = jnp.maximum(x * params_ref[j] + params_ref[HID + j], 0.0)
        acc = acc + h * params_ref[2 * HID + j]
    o_ref[...] = acc


def _mlp_jnp(x_flat, params):
    # Tiny-batch fast path: let XLA fuse the whole MLP into one fusion.
    w1 = params[:HID]
    b1 = params[HID:2 * HID]
    w2 = params[2 * HID:3 * HID]
    b2 = params[3 * HID]
    h = jnp.maximum(x_flat[:, None] * w1[None, :] + b1[None, :], 0.0)
    return h @ w2 + b2


def net_forward(x, params, *, target_block_bytes=2 << 20, min_pallas_batch=8192):
    """x: (N, 1) f32, params: f32[16] -> (N, 1) f32 = relu(x@W1+b1)@W2+b2."""
    n = x.shape[0]
    x_flat = x.reshape(-1).astype(jnp.float32)

    # Small batches: a single-tile pallas_call is pure launch overhead.
    if n < min_pallas_batch:
        return _mlp_jnp(x_flat, params).reshape(n, 1)

    lanes = LANES
    # Rows per block: multiple of 8, sized so one block is ~target_block_bytes.
    rows_target = max(8, (((target_block_bytes // 4) // lanes) // 8) * 8)
    rows_needed = -(-n // lanes)                       # ceil(n / lanes)
    rows = min(rows_target, -(-rows_needed // 8) * 8)  # don't exceed what's needed
    block_elems = rows * lanes
    # Pad the batch up to a whole number of blocks (cheap) — no degenerate
    # tile-width fallback, every grid step is a full, aligned (rows, lanes) tile.
    n_pad = -(-n // block_elems) * block_elems
    total_rows = n_pad // lanes
    grid = (total_rows // rows,)

    # Flat pad + reshape into the packed 2D slab (lane- and sublane-dense).
    x2d = jnp.pad(x_flat, (0, n_pad - n)).reshape(total_rows, lanes)

    out2d = pl.pallas_call(
        mlp_kernel,
        out_shape=jax.ShapeDtypeStruct((total_rows, lanes), jnp.float32),
        grid=grid,
        in_specs=[
            # All 16 parameter scalars in one SMEM array (single tiny transfer).
            pl.BlockSpec(memory_space=pltpu.MemorySpace.SMEM),
            # Packed input block: (rows, lanes), indexed over rows only.
            pl.BlockSpec((rows, lanes), lambda i: (i, 0)),
        ],
        out_specs=pl.BlockSpec((rows, lanes), lambda i: (i, 0)),
        compiler_params=pltpu.CompilerParams(
            # Blocks are independent -> pipeline and shard across TensorCores.
            dimension_semantics=("parallel",),
        ),
    )(params, x2d)

    # Padded lanes hold relu(b1)*w2+b2 garbage; sliced off lazily here.
    return out2d.reshape(-1)[:n].reshape(n, 1)


def init_params(key):
    # Deterministic init mimicking nn.Linear's U(-1/sqrt(fan_in), 1/sqrt(fan_in)).
    k1, k2, k3, k4 = jax.random.split(key, 4)
    bound1 = 1.0                   # fc1: fan_in = 1
    bound2 = 1.0 / jnp.sqrt(5.0)   # fc2: fan_in = 5
    w1 = jax.random.uniform(k1, (HID,), jnp.float32, -bound1, bound1)  # fc1.weight (5,1) flattened
    b1 = jax.random.uniform(k2, (HID,), jnp.float32, -bound1, bound1)  # fc1.bias
    w2 = jax.random.uniform(k3, (HID,), jnp.float32, -bound2, bound2)  # fc2.weight (1,5) flattened
    b2 = jax.random.uniform(k4, (1,), jnp.float32, -bound2, bound2)    # fc2.bias
    # Pack all 16 scalars into one array: [w1, b1, w2, b2].
    params = jnp.concatenate([w1, b1, w2, b2]).astype(jnp.float32)
    return params, (w1, b1, w2, b2)


def reference_forward(x, w1, b1, w2, b2):
    h = jnp.maximum(x @ w1[None, :] + b1[None, :], 0.0)   # (N, 5)
    return h @ w2[:, None] + b2[None, :]                  # (N, 1)


if __name__ == "__main__":
    key = jax.random.PRNGKey(0)
    params, (w1, b1, w2, b2) = init_params(key)

    # Same input as the PyTorch script: shape (20, 1).
    x = jnp.array(
        [[5.0], [10.0], [10.0], [5.0], [10.0], [5.0], [10.0], [10.0], [5.0],
         [10.0], [5.0], [10.0], [10.0], [5.0], [10.0], [5.0], [10.0], [10.0],
         [5.0], [10.0]],
        dtype=jnp.float32,
    )

    # Force the Pallas path (min_pallas_batch=0) so the kernel itself runs.
    out = net_forward(x, params, min_pallas_batch=0)
    out = jax.block_until_ready(out)
    ref = reference_forward(x, w1, b1, w2, b2)
    assert out.shape == (20, 1)
    assert jnp.allclose(out, ref, atol=1e-5, rtol=1e-5)

    # Also exercise the multi-block packed path (grid > 1) at a modest size.
    xb = jax.random.uniform(jax.random.fold_in(key, 1), (12288, 1),
                            jnp.float32, -10.0, 10.0)
    outb = net_forward(xb, params, target_block_bytes=16384, min_pallas_batch=0)
    outb = jax.block_until_ready(outb)
    refb = reference_forward(xb, w1, b1, w2, b2)
    assert outb.shape == (12288, 1)
    assert jnp.allclose(outb, refb, atol=1e-4, rtol=1e-4)

    print("KERNEL_OK")
</pallas_src>

<mosaic_0001>
module attributes {stable_mosaic.version = 11 : i64} {
  func.func @mlp_kernel(%arg0: i32, %arg1: memref<16xf32, #tpu.memory_space<smem>>, %arg2: memref<8x512xf32, #tpu.memory_space<vmem>>, %arg3: memref<8x512xf32, #tpu.memory_space<vmem>>) attributes {dimension_semantics = [#tpu.dimension_semantics<parallel>], iteration_bounds = array<i64: 1>, scalar_prefetch = 0 : i64, scratch_operands = 0 : i64, tpu.core_type = #tpu.core_type<tc>, window_params = [{transform_indices = @transform_0, window_bounds = array<i64: 16>}, {transform_indices = @transform_1, window_bounds = array<i64: 8, 512>}, {transform_indices = @transform_2, window_bounds = array<i64: 8, 512>}]} {
    %c0 = arith.constant 0 : index
    %c0_0 = arith.constant 0 : index
    %0 = vector.load %arg2[%c0, %c0_0] : memref<8x512xf32, #tpu.memory_space<vmem>>, vector<8x512xf32>
    %c15 = arith.constant 15 : index
    %1 = memref.load %arg1[%c15] : memref<16xf32, #tpu.memory_space<smem>>
    %2 = vector.broadcast %1 : f32 to vector<8x512xf32>
    %c0_1 = arith.constant 0 : index
    %3 = memref.load %arg1[%c0_1] : memref<16xf32, #tpu.memory_space<smem>>
    %4 = vector.broadcast %3 : f32 to vector<8x512xf32>
    %5 = arith.mulf %0, %4 : vector<8x512xf32>
    %c5 = arith.constant 5 : index
    %6 = memref.load %arg1[%c5] : memref<16xf32, #tpu.memory_space<smem>>
    %7 = vector.broadcast %6 : f32 to vector<8x512xf32>
    %8 = arith.addf %5, %7 : vector<8x512xf32>
    %cst = arith.constant 0.000000e+00 : f32
    %9 = vector.broadcast %cst : f32 to vector<8x512xf32>
    %10 = arith.maximumf %8, %9 : vector<8x512xf32>
    %c10 = arith.constant 10 : index
    %11 = memref.load %arg1[%c10] : memref<16xf32, #tpu.memory_space<smem>>
    %12 = vector.broadcast %11 : f32 to vector<8x512xf32>
    %13 = arith.mulf %10, %12 : vector<8x512xf32>
    %14 = arith.addf %2, %13 : vector<8x512xf32>
    %c1 = arith.constant 1 : index
    %15 = memref.load %arg1[%c1] : memref<16xf32, #tpu.memory_space<smem>>
    %16 = vector.broadcast %15 : f32 to vector<8x512xf32>
    %17 = arith.mulf %0, %16 : vector<8x512xf32>
    %c6 = arith.constant 6 : index
    %18 = memref.load %arg1[%c6] : memref<16xf32, #tpu.memory_space<smem>>
    %19 = vector.broadcast %18 : f32 to vector<8x512xf32>
    %20 = arith.addf %17, %19 : vector<8x512xf32>
    %cst_2 = arith.constant 0.000000e+00 : f32
    %21 = vector.broadcast %cst_2 : f32 to vector<8x512xf32>
    %22 = arith.maximumf %20, %21 : vector<8x512xf32>
    %c11 = arith.constant 11 : index
    %23 = memref.load %arg1[%c11] : memref<16xf32, #tpu.memory_space<smem>>
    %24 = vector.broadcast %23 : f32 to vector<8x512xf32>
    %25 = arith.mulf %22, %24 : vector<8x512xf32>
    %26 = arith.addf %14, %25 : vector<8x512xf32>
    %c2 = arith.constant 2 : index
    %27 = memref.load %arg1[%c2] : memref<16xf32, #tpu.memory_space<smem>>
    %28 = vector.broadcast %27 : f32 to vector<8x512xf32>
    %29 = arith.mulf %0, %28 : vector<8x512xf32>
    %c7 = arith.constant 7 : index
    %30 = memref.load %arg1[%c7] : memref<16xf32, #tpu.memory_space<smem>>
    %31 = vector.broadcast %30 : f32 to vector<8x512xf32>
    %32 = arith.addf %29, %31 : vector<8x512xf32>
    %cst_3 = arith.constant 0.000000e+00 : f32
    %33 = vector.broadcast %cst_3 : f32 to vector<8x512xf32>
    %34 = arith.maximumf %32, %33 : vector<8x512xf32>
    %c12 = arith.constant 12 : index
    %35 = memref.load %arg1[%c12] : memref<16xf32, #tpu.memory_space<smem>>
    %36 = vector.broadcast %35 : f32 to vector<8x512xf32>
    %37 = arith.mulf %34, %36 : vector<8x512xf32>
    %38 = arith.addf %26, %37 : vector<8x512xf32>
    %c3 = arith.constant 3 : index
    %39 = memref.load %arg1[%c3] : memref<16xf32, #tpu.memory_space<smem>>
    %40 = vector.broadcast %39 : f32 to vector<8x512xf32>
    %41 = arith.mulf %0, %40 : vector<8x512xf32>
    %c8 = arith.constant 8 : index
    %42 = memref.load %arg1[%c8] : memref<16xf32, #tpu.memory_space<smem>>
    %43 = vector.broadcast %42 : f32 to vector<8x512xf32>
    %44 = arith.addf %41, %43 : vector<8x512xf32>
    %cst_4 = arith.constant 0.000000e+00 : f32
    %45 = vector.broadcast %cst_4 : f32 to vector<8x512xf32>
    %46 = arith.maximumf %44, %45 : vector<8x512xf32>
    %c13 = arith.constant 13 : index
    %47 = memref.load %arg1[%c13] : memref<16xf32, #tpu.memory_space<smem>>
    %48 = vector.broadcast %47 : f32 to vector<8x512xf32>
    %49 = arith.mulf %46, %48 : vector<8x512xf32>
    %50 = arith.addf %38, %49 : vector<8x512xf32>
    %c4 = arith.constant 4 : index
    %51 = memref.load %arg1[%c4] : memref<16xf32, #tpu.memory_space<smem>>
    %52 = vector.broadcast %51 : f32 to vector<8x512xf32>
    %53 = arith.mulf %0, %52 : vector<8x512xf32>
    %c9 = arith.constant 9 : index
    %54 = memref.load %arg1[%c9] : memref<16xf32, #tpu.memory_space<smem>>
    %55 = vector.broadcast %54 : f32 to vector<8x512xf32>
    %56 = arith.addf %53, %55 : vector<8x512xf32>
    %cst_5 = arith.constant 0.000000e+00 : f32
    %57 = vector.broadcast %cst_5 : f32 to vector<8x512xf32>
    %58 = arith.maximumf %56, %57 : vector<8x512xf32>
    %c14 = arith.constant 14 : index
    %59 = memref.load %arg1[%c14] : memref<16xf32, #tpu.memory_space<smem>>
    %60 = vector.broadcast %59 : f32 to vector<8x512xf32>
    %61 = arith.mulf %58, %60 : vector<8x512xf32>
    %62 = arith.addf %50, %61 : vector<8x512xf32>
    %c0_6 = arith.constant 0 : index
    %c0_7 = arith.constant 0 : index
    %63 = vector.load %arg3[%c0_6, %c0_7] : memref<8x512xf32, #tpu.memory_space<vmem>>, vector<8x512xf32>
    tpu.vector_store %arg3[%c0_6, %c0_7], %62 {strides = array<i32>} : memref<8x512xf32, #tpu.memory_space<vmem>>, vector<8x512xf32>,
    return
  }
  func.func @transform_0(%arg0: i32) -> i32 {
    %c0_i32 = arith.constant 0 : i32
    %c0_i32_0 = arith.constant 0 : i32
    return %c0_i32 : i32
  }
  func.func @transform_1(%arg0: i32) -> (i32, i32) {
    %c0_i32 = arith.constant 0 : i32
    %c0_i32_0 = arith.constant 0 : i32
    return %arg0, %c0_i32 : i32, i32
  }
  func.func @transform_2(%arg0: i32) -> (i32, i32) {
    %c0_i32 = arith.constant 0 : i32
    %c0_i32_0 = arith.constant 0 : i32
    return %arg0, %c0_i32 : i32, i32
  }
}

</mosaic_0001>

<bundles_post_ra>
// kernel: tpu_custom_call.1
= control target key start
LH: loop header
LB: loop body
LE: loop exit
PB: predicated region body
PF: predicated region fallthrough
CT: control target
= control target key end

     0   :  { %7 = vsyncpa [#allocation5], 0  ;;  %s411_s0 = inlined_call_operand.hbm [shape: f32[16], index: 0, kind: input, shape index: {}]   ;;  %s412_s1 = inlined_call_operand.hbm [shape: f32[8,512], index: 1, kind: input, shape index: {}]   ;;  %s413_s2 = inlined_call_operand.hbm [shape: f32[8,512], index: 2, kind: output, shape index: {}]  }
   0x1   :  { %8 = vsyncpa [#allocation3], 0 }
   0x2   :  { %9 = vsyncpa [#allocation4], 0  ;;  %s15_s11 = sshll.u32 %s411_s0, 4  ;;  %s24_s14 = sshll.u32 %s412_s1, 4  ;;  %s16_s11 = int_to_ptr.hbm [resolvable:$true] %s15_s11  ;;  %s25_s14 = int_to_ptr.hbm [resolvable:$true] %s24_s14 }
   0x3   :  { %s281_s15 = smov [#allocation2]   ;;  %s282_s16 = smov [#allocation6]  }
   0x4   :  { %18 = dma.hbm_to_smem %s16_s11, 16, %s281_s15, [#allocation5]  }
   0x5   :  { %s26_s17 = sshll.u32 %s282_s16, 4  ;;  %s27_s17 = int_to_ptr.vmem [resolvable:$true] %s26_s17 }
   0x6   :  { %29 = dma.hbm_to_vmem [thread:$0]  %s25_s14, 512, %s27_s17, [#allocation3]  }
   0x7   :  { %275 = dma.done.wait [#allocation5], 16  }
   0x8   :  { %276 = vsyncadd [#allocation5], 4294967280 }
   0x9   :  { %277 = dma.done.wait [#allocation3], 512  }
   0xa   :  { %278 = vsyncadd [#allocation3], 4294966784 }
   0xb   :  { %38 = sfence }
   0xc   :  { %s197_s18 = sld [smem:[#allocation2 + $0xf]]  ;;  %v305_v0 = vld [vmem:[#allocation6] sm:$0xff]  ;;  %v307_v1 = vld [vmem:[#allocation6 + $0x8] sm:$0xff]  ;;  %v309_v2 = vld [vmem:[#allocation6 + $0x10] sm:$0xff]  ;;  %s283_s4 = smov [#allocation7]  }
   0xd   :  { %s45_s19 = sld [smem:[#allocation2]]  ;;  %v311_v3 = vld [vmem:[#allocation6 + $0x18] sm:$0xff]  ;;  %s184_s5 = sshll.u32 %s283_s4, 4  ;;  %s185_s5 = int_to_ptr.vmem [resolvable:$true] %s184_s5 }
   0xe   :  { %s198_s0 = sld [smem:[#allocation2 + $0x5]]  ;;  %s186_s8 = sshll.u32 %s413_s2, 4  ;;  %s187_s8 = int_to_ptr.hbm [resolvable:$true] %s186_s8 }
   0xf   :  { %s199_s20 = sld [smem:[#allocation2 + $0xa]] }
  0x10   :  { %s200_s21 = sld [smem:[#allocation2 + $0x1]] }
  0x11   :  { %s201_s1 = sld [smem:[#allocation2 + $0x6]] }
  0x12   :  { %s202_s22 = sld [smem:[#allocation2 + $0xb]]  ;;  %v318_v9 = vstv %s197_s18 }
  0x13   :  { %v46_v4 = vstv %s45_s19  ;;  %s203_s23 = sld [smem:[#allocation2 + $0x2]] }
  0x14   :  { %v47_v5 = vmul.f32 %v46_v4, %v305_v0  ;;  %v314_v6 = vstv %s198_s0  ;;  %s204_s24 = sld [smem:[#allocation2 + $0x7]]  ;;  %v48_v7 = vmul.f32 %v46_v4, %v307_v1  ;;  %v49_v8 = vmul.f32 %v46_v4, %v309_v2 }
  0x15   :  { %v320_v10 = vstv %s199_s20  ;;  %s205_s25 = sld [smem:[#allocation2 + $0xc]]  ;;  %v323_v11 = vmul.f32 %v46_v4, %v311_v3 }
  0x16   :  { %v53_v12 = vadd.f32 %v314_v6, %v47_v5  ;;  %v326_v13 = vstv %s200_s21  ;;  %s206_s26 = sld [smem:[#allocation2 + $0x3]]  ;;  %v54_v14 = vadd.f32 %v314_v6, %v48_v7  ;;  %v55_v15 = vadd.f32 %v314_v6, %v49_v8 }
  0x17   :  { %v73_v16 = vmul.f32 %v326_v13, %v305_v0  ;;  %v332_v17 = vstv %s201_s1  ;;  %s207_s27 = sld [smem:[#allocation2 + $0x8]]  ;;  %v74_v18 = vmul.f32 %v326_v13, %v307_v1  ;;  %v75_v19 = vmul.f32 %v326_v13, %v309_v2 }
  0x18   :  { %v57_v20 = vmax.f32 %v53_v12, 0.0  ;;  %v338_v21 = vstv %s202_s22  ;;  %s208_s28 = sld [smem:[#allocation2 + $0xd]]  ;;  %v58_v22 = vmax.f32 %v54_v14, 0.0  ;;  %v59_v23 = vmax.f32 %v55_v15, 0.0 }
  0x19   :  { %v79_v24 = vadd.f32 %v332_v17, %v73_v16  ;;  %v341_v25 = vstv %s203_s23  ;;  %s209_s29 = sld [smem:[#allocation2 + $0x4]]  ;;  %v80_v26 = vadd.f32 %v332_v17, %v74_v18  ;;  %v81_v27 = vadd.f32 %v332_v17, %v75_v19 }
  0x1a   :  { %v63_v28 = vmul.f32 %v320_v10, %v57_v20  ;;  %v99_v29 = vmul.f32 %v341_v25, %v305_v0  ;;  %v348_v30 = vstv %s204_s24  ;;  %s210_s30 = sld [smem:[#allocation2 + $0x9]]  ;;  %v64_v31 = vmul.f32 %v320_v10, %v58_v22 }
  0x1b   :  { %v83_v32 = vmax.f32 %v79_v24, 0.0  ;;  %v351_v33 = vstv %s205_s25  ;;  %s211_s3 = sld [smem:[#allocation2 + $0xe]]  ;;  %v84_v34 = vmax.f32 %v80_v26, 0.0  ;;  %v100_v35 = vmul.f32 %v341_v25, %v307_v1 }
  0x1c   :  { %v67_v36 = vadd.f32 %v63_v28, %v318_v9  ;;  %v105_v37 = vadd.f32 %v348_v30, %v99_v29  ;;  %v124_v38 = vstv %s206_s26  ;;  %v68_v39 = vadd.f32 %v64_v31, %v318_v9 }
  0x1d   :  { %v89_v40 = vmul.f32 %v338_v21, %v83_v32  ;;  %v125_v41 = vmul.f32 %v124_v38, %v305_v0  ;;  %v360_v42 = vstv %s207_s27  ;;  %v90_v43 = vmul.f32 %v338_v21, %v84_v34 }
  0x1e   :  { %v109_v44 = vmax.f32 %v105_v37, 0.0  ;;  %v363_v45 = vstv %s208_s28  ;;  %v106_v46 = vadd.f32 %v348_v30, %v100_v35  ;;  %v126_v47 = vmul.f32 %v124_v38, %v307_v1 }
  0x1f   :  { %v93_v48 = vadd.f32 %v89_v40, %v67_v36  ;;  %v131_v49 = vadd.f32 %v360_v42, %v125_v41  ;;  %v150_v50 = vstv %s209_s29  ;;  %v94_v51 = vadd.f32 %v90_v43, %v68_v39 }
  0x20   :  { %v115_v52 = vmul.f32 %v351_v33, %v109_v44  ;;  %v151_v53 = vmul.f32 %v150_v50, %v305_v0  ;;  %v156_v54 = vstv %s210_s30  ;;  %v110_v55 = vmax.f32 %v106_v46, 0.0 }
  0x21   :  { %v135_v56 = vmax.f32 %v131_v49, 0.0  ;;  %v370_v57 = vstv %s211_s3  ;;  %v132_v58 = vadd.f32 %v360_v42, %v126_v47  ;;  %v152_v59 = vmul.f32 %v150_v50, %v307_v1 }
  0x22   :  { %v119_v60 = vadd.f32 %v115_v52, %v93_v48  ;;  %v157_v61 = vadd.f32 %v156_v54, %v151_v53  ;;  %v116_v62 = vmul.f32 %v351_v33, %v110_v55  ;;  %v65_v63 = vmul.f32 %v320_v10, %v59_v23 }
  0x23   :  { %v141_v4 = vmul.f32 %v363_v45, %v135_v56  ;;  %v136_v5 = vmax.f32 %v132_v58, 0.0  ;;  %v158_v7 = vadd.f32 %v156_v54, %v152_v59  ;;  %v85_v0 = vmax.f32 %v81_v27, 0.0 }
  0x24   :  { %v161_v8 = vmax.f32 %v157_v61, 0.0  ;;  %v120_v12 = vadd.f32 %v116_v62, %v94_v51  ;;  %v69_v14 = vadd.f32 %v65_v63, %v318_v9  ;;  %v101_v15 = vmul.f32 %v341_v25, %v309_v2 }
  0x25   :  { %v145_v16 = vadd.f32 %v141_v4, %v119_v60  ;;  %v142_v1 = vmul.f32 %v363_v45, %v136_v5  ;;  %v162_v18 = vmax.f32 %v158_v7, 0.0  ;;  %v91_v19 = vmul.f32 %v338_v21, %v85_v0 }
  0x26   :  { %v167_v20 = vmul.f32 %v370_v57, %v161_v8  ;;  %v107_v22 = vadd.f32 %v348_v30, %v101_v15  ;;  %v127_v23 = vmul.f32 %v124_v38, %v309_v2  ;;  %v153_v24 = vmul.f32 %v150_v50, %v309_v2 }
  0x27   :  { %v146_v26 = vadd.f32 %v142_v1, %v120_v12  ;;  %v168_v27 = vmul.f32 %v370_v57, %v162_v18  ;;  %v95_v28 = vadd.f32 %v91_v19, %v69_v14  ;;  %v56_v29 = vadd.f32 %v314_v6, %v323_v11 }
  0x28   :  { %v171_v31 = vadd.f32 %v167_v20, %v145_v16  ;;  %v111_v32 = vmax.f32 %v107_v22, 0.0  ;;  %v133_v34 = vadd.f32 %v360_v42, %v127_v23  ;;  %v159_v35 = vadd.f32 %v156_v54, %v153_v24 }
  0x29   :  { %v172_v36 = vadd.f32 %v168_v27, %v146_v26  ;;  %v60_v37 = vmax.f32 %v56_v29, 0.0  ;;  %v76_v39 = vmul.f32 %v326_v13, %v311_v3  ;;  %v102_v2 = vmul.f32 %v341_v25, %v311_v3 }
  0x2a   :  { %175 = vst [vmem:[#allocation7] sm:$0xff] %v171_v31  ;;  %v117_v40 = vmul.f32 %v351_v33, %v111_v32  ;;  %v137_v41 = vmax.f32 %v133_v34, 0.0  ;;  %v163_v43 = vmax.f32 %v159_v35, 0.0  ;;  %v128_v6 = vmul.f32 %v124_v38, %v311_v3 }
  0x2b   :  { %176 = vst [vmem:[#allocation7 + $0x8] sm:$0xff] %v172_v36  ;;  %v66_v11 = vmul.f32 %v320_v10, %v60_v37  ;;  %v82_v44 = vadd.f32 %v332_v17, %v76_v39  ;;  %v108_v46 = vadd.f32 %v348_v30, %v102_v2  ;;  %v154_v47 = vmul.f32 %v150_v50, %v311_v3 }
  0x2c   :  { %v121_v13 = vadd.f32 %v117_v40, %v95_v28  ;;  %v143_v48 = vmul.f32 %v363_v45, %v137_v41  ;;  %v169_v25 = vmul.f32 %v370_v57, %v163_v43  ;;  %v134_v49 = vadd.f32 %v360_v42, %v128_v6 }
  0x2d   :  { %v70_v51 = vadd.f32 %v66_v11, %v318_v9  ;;  %v86_v52 = vmax.f32 %v82_v44, 0.0  ;;  %v112_v38 = vmax.f32 %v108_v46, 0.0  ;;  %v160_v53 = vadd.f32 %v156_v54, %v154_v47 }
  0x2e   :  { %v147_v55 = vadd.f32 %v143_v48, %v121_v13  ;;  %v138_v10 = vmax.f32 %v134_v49, 0.0 }
  0x2f   :  { %v92_v17 = vmul.f32 %v338_v21, %v86_v52  ;;  %v118_v30 = vmul.f32 %v351_v33, %v112_v38  ;;  %v164_v56 = vmax.f32 %v160_v53, 0.0 }
  0x30   :  { %v173_v3 = vadd.f32 %v169_v25, %v147_v55  ;;  %v144_v58 = vmul.f32 %v363_v45, %v138_v10 }
  0x31   :  { %v96_v50 = vadd.f32 %v92_v17, %v70_v51  ;;  %v170_v42 = vmul.f32 %v370_v57, %v164_v56 }
  0x32   :  { %177 = vst [vmem:[#allocation7 + $0x10] sm:$0xff] %v173_v3 }
  0x33   :  { %v122_v59 = vadd.f32 %v118_v30, %v96_v50 }
  0x35   :  { %v148_v9 = vadd.f32 %v144_v58, %v122_v59 }
  0x37   :  { %v174_v54 = vadd.f32 %v170_v42, %v148_v9 }
  0x39   :  { %178 = vst [vmem:[#allocation7 + $0x18] sm:$0xff] %v174_v54 }
  0x3a   :  { %189 = dma.vmem_to_hbm [thread:$0]  %s185_s5, 512, %s187_s8, [#allocation4]  }
  0x3b   :  { %279 = dma.done.wait [#allocation4], 512  }
  0x3c   :  { %280 = vsyncadd [#allocation4], 4294966784 }
  0x3d   :  { %194 = vsyncpa [#allocation3], 1 }
  0x3e   :  { %195 = vsyncpa [#allocation4], 1 }
  0x3f   :  { %196 = vsyncpa [#allocation5], 1 }

</bundles_post_ra>
